<compile_context>
chip_gen: v7x
topology: tpu7x:2x2x1
jax: 0.10.0
libtpu: 0.0.40
codegen_flags: <defaults>
</compile_context>

<pallas_src>
import jax
import jax.numpy as jnp
from jax.experimental import pallas as pl
from jax.experimental.pallas import tpu as pltpu

_LANES = 128
_NEG_BIG = -1e30  # bias for padded class lanes: exp(pad_logit - row_max) == 0


# --------------------------------------------------------------------------------------
# small helpers
# --------------------------------------------------------------------------------------
def _round_up(x, m):
    return ((x + m - 1) // m) * m


def _vmem_budget_bytes():
    """Per-generation VMEM budget (bytes) with headroom for compiler scratch."""
    phys = 64 << 20  # conservative default (v7x per-TC physical VMEM)
    try:
        info = pltpu.get_tpu_info()
        cap = getattr(info, "vmem_capacity_bytes", None)
        if cap:
            phys = int(cap)
    except Exception:
        pass
    return (phys * 3) // 4  # leave ~25% headroom


def _num_tensorcores():
    """2 on megacore chips (v4 / v5p / v7x), else 1."""
    try:
        kind = jax.devices()[0].device_kind.lower()
    except Exception:
        return 1
    return 2 if any(tag in kind for tag in ("v7", "v4", "v5p")) else 1


def _softmax_f32(logits):
    m = jnp.max(logits, axis=-1, keepdims=True)
    e = jnp.exp(logits - m)
    denom = jnp.sum(e, axis=-1, keepdims=True)
    # EUP approx reciprocal (free slot next to exp) + one Newton step for accuracy.
    inv = pl.reciprocal(denom, approx=True)
    inv = inv * (2.0 - denom * inv)
    return e * inv


# --------------------------------------------------------------------------------------
# kernels
# --------------------------------------------------------------------------------------
def _write_outputs(mode, out_refs, logits_f32):
    if mode == "both":
        out_refs[0][...] = logits_f32.astype(out_refs[0].dtype)
        out_refs[1][...] = _softmax_f32(logits_f32).astype(out_refs[1].dtype)
    elif mode == "logits":
        out_refs[0][...] = logits_f32.astype(out_refs[0].dtype)
    else:  # "probs"
        out_refs[0][...] = _softmax_f32(logits_f32).astype(out_refs[0].dtype)


def _make_fast_kernel(mode):
    """Single K step: W fully resident, no accumulator scratch, no zero/+= passes."""

    def kernel(x_ref, w_ref, b_ref, *out_refs):
        logits = jnp.dot(x_ref[...], w_ref[...],
                         preferred_element_type=jnp.float32) + b_ref[...]
        _write_outputs(mode, out_refs, logits)

    return kernel


def _make_tiled_kernel(mode, d_total, tk):
    """K-tiled path with f32 VMEM accumulator; ragged last K tile masked in-kernel."""
    rem = d_total % tk

    def kernel(x_ref, w_ref, b_ref, *rest):
        out_refs, acc_ref = rest[:-1], rest[-1]
        k = pl.program_id(1)

        @pl.when(k == 0)
        def _():
            acc_ref[...] = jnp.zeros_like(acc_ref)

        xv = x_ref[...]
        wv = w_ref[...]
        if rem:
            # last K tile is partial: zero the tail columns of x / tail rows of W so
            # out-of-bounds garbage (possibly inf/NaN) never enters the accumulator.
            valid = d_total - k * tk  # >= tk on non-last steps -> mask is a no-op
            col = jax.lax.broadcasted_iota(jnp.int32, xv.shape, 1)
            xv = jnp.where(col < valid, xv, jnp.zeros_like(xv))
            row = jax.lax.broadcasted_iota(jnp.int32, wv.shape, 0)
            wv = jnp.where(row < valid, wv, jnp.zeros_like(wv))

        # Operands fed to the MXU in their native dtype (bf16 or f32); f32 accumulation.
        acc_ref[...] += jnp.dot(xv, wv, preferred_element_type=jnp.float32)

        @pl.when(k == pl.num_programs(1) - 1)
        def _():
            _write_outputs(mode, out_refs, acc_ref[...] + b_ref[...])

    return kernel


# --------------------------------------------------------------------------------------
# build-time parameter preparation (done ONCE, reused every forward call)
# --------------------------------------------------------------------------------------
def prepare_padded_params(w, b):
    """Pad W:(D,C)->(D,Cp) with zeros and b->(1,Cp) with -1e30 on padded lanes,
    Cp = round_up(C, 128).  Call once at model build time."""
    D, C = w.shape
    Cp = max(_LANES, _round_up(C, _LANES))
    w_p = w if Cp == C else jnp.zeros((D, Cp), w.dtype).at[:, :C].set(w)
    b_p = jnp.full((1, Cp), _NEG_BIG, jnp.float32).at[0, :C].set(
        b.astype(jnp.float32).reshape(C))
    return w_p, b_p


# --------------------------------------------------------------------------------------
# tile selection (VMEM-budget driven)
# --------------------------------------------------------------------------------------
def _pick_tiles(B, D, Cp, x_sz, w_sz, out_sz, n_out, usable, sub, n_cores,
                block_batch=None, block_k=None):
    """Return (tb, tk, resident). resident=True => single K step (tk == D)."""

    def footprint(tb, tk, resident):
        fp = 2 * tb * tk * x_sz              # double-buffered x tile
        fp += 2 * tk * Cp * w_sz             # W tile (double-buffered worst case)
        fp += 2 * Cp * 4                     # bias
        fp += 2 * n_out * tb * Cp * out_sz   # double-buffered outputs
        if not resident:
            fp += tb * Cp * 4                # f32 accumulator scratch
        return fp

    tb_cap = _round_up(B, sub)
    if n_cores >= 2 and B >= 2 * sub:
        # guarantee >= 2 programs on the "parallel" batch axis (megacore sharding)
        tb_cap = min(tb_cap, _round_up((B + 1) // 2, sub))
    if block_batch is not None:
        tb_cap = min(tb_cap, max(sub, (min(block_batch, B) // sub) * sub))

    tb_cands = sorted({max(sub, (c // sub) * sub)
                       for c in (tb_cap, 2048, 1024, 512, 256, 128, 64, 32, 16, 8)
                       if c <= tb_cap}, reverse=True) or [sub]

    # --- user-forced K tile -----------------------------------------------------------
    if block_k is not None and block_k < D:
        tk = max(_LANES, (min(block_k, D) // _LANES) * _LANES)
        for tb in tb_cands:
            if footprint(tb, tk, False) <= usable:
                return tb, tk, False
        return tb_cands[-1], tk, False

    # --- preferred: W fully resident, single K step, no accumulator --------------------
    for tb in tb_cands:
        if footprint(tb, D, True) <= usable:
            return tb, D, True

    # --- fall back to K-tiling ----------------------------------------------------------
    tk_cap = min(D, 2048 if x_sz <= 2 else 1024)
    tk_cands = list(range((tk_cap // _LANES) * _LANES, 0, -_LANES)) or [_LANES]
    # prefer a tk dividing D (no ragged tail => no in-kernel masking)
    tk = next((c for c in tk_cands if D % c == 0), tk_cands[0])
    while True:
        for tb in tb_cands:
            if footprint(tb, tk, False) <= usable:
                return tb, tk, False
        if tk <= _LANES:
            return tb_cands[-1], _LANES, False
        tk = max(_LANES, ((tk // 2) // _LANES) * _LANES)


# --------------------------------------------------------------------------------------
# forward wrapper
# --------------------------------------------------------------------------------------
def linear_classifier_forward(x, w_padded, b_padded, num_classes, *,
                              outputs="both", block_batch=None, block_k=None):
    """logits = x @ W + b (and/or probs = softmax(logits, 1)) via a Pallas TPU kernel.

    `w_padded` / `b_padded` come from prepare_padded_params (build-time padding).
    outputs: "logits" | "probs" | "both".
    """
    assert outputs in ("logits", "probs", "both")
    B, D = x.shape
    Dw, Cp = w_padded.shape
    assert D == Dw and Cp % _LANES == 0 and b_padded.shape == (1, Cp)
    C = int(num_classes)
    out_dtype = x.dtype

    x_sz = jnp.dtype(x.dtype).itemsize
    w_sz = jnp.dtype(w_padded.dtype).itemsize
    out_sz = jnp.dtype(out_dtype).itemsize
    n_out = 2 if outputs == "both" else 1

    budget = _vmem_budget_bytes()
    usable = int(budget * 0.9)
    # bf16 rows pack 16/sublane-pair; only round to 16 when the batch is big enough.
    sub = 16 if (x_sz == 2 and B >= 16) else 8

    tb, tk, resident = _pick_tiles(B, D, Cp, x_sz, w_sz, out_sz, n_out, usable, sub,
                                   _num_tensorcores(), block_batch, block_k)
    nb = pl.cdiv(B, tb)

    if resident:
        grid = (nb,)
        in_specs = [
            pl.BlockSpec((tb, D), lambda i: (i, 0)),
            pl.BlockSpec((D, Cp), lambda i: (0, 0)),   # constant block index -> W DMA'd once
            pl.BlockSpec((1, Cp), lambda i: (0, 0)),
        ]
        out_block = pl.BlockSpec((tb, Cp), lambda i: (i, 0))
        scratch = []
        sem = ("parallel",)
        kernel = _make_fast_kernel(outputs)
    else:
        nk = pl.cdiv(D, tk)
        grid = (nb, nk)
        in_specs = [
            pl.BlockSpec((tb, tk), lambda i, k: (i, k)),
            pl.BlockSpec((tk, Cp), lambda i, k: (k, 0)),
            pl.BlockSpec((1, Cp), lambda i, k: (0, 0)),
        ]
        out_block = pl.BlockSpec((tb, Cp), lambda i, k: (i, 0))
        scratch = [pltpu.VMEM((tb, Cp), jnp.float32)]
        sem = ("parallel", "arbitrary")
        kernel = _make_tiled_kernel(outputs, D, tk)

    if outputs == "both":
        out_shape = (jax.ShapeDtypeStruct((B, Cp), out_dtype),
                     jax.ShapeDtypeStruct((B, Cp), out_dtype))
        out_specs = (out_block, out_block)
    else:
        out_shape = jax.ShapeDtypeStruct((B, Cp), out_dtype)
        out_specs = out_block

    result = pl.pallas_call(
        kernel,
        out_shape=out_shape,
        grid_spec=pltpu.PrefetchScalarGridSpec(
            num_scalar_prefetch=0,
            grid=grid,
            in_specs=in_specs,
            out_specs=out_specs,
            scratch_shapes=scratch,
        ),
        compiler_params=pltpu.CompilerParams(
            dimension_semantics=sem,
            vmem_limit_bytes=int(budget),
        ),
    )(x, w_padded, b_padded)

    def trim(a):  # drop padded class lanes (they hold -1e30 logits / ~0 probs)
        return a if Cp == C else a[:, :C]

    if outputs == "both":
        return trim(result[0]), trim(result[1])
    return trim(result)


# --------------------------------------------------------------------------------------
# minimal concrete realization of the abstract Model
# --------------------------------------------------------------------------------------
class LinearClassifierModel:
    """Model(input_dim, num_classes) with the linear forward its contract implies."""

    def __init__(self, input_dim, num_classes, *, key, param_dtype=jnp.float32):
        self.input_dim = int(input_dim)
        self.num_classes = int(num_classes)
        kw, kb = jax.random.split(key)
        bound = float(input_dim) ** -0.5
        self.w = jax.random.uniform(kw, (input_dim, num_classes), jnp.float32,
                                    -bound, bound).astype(param_dtype)
        self.b = jax.random.uniform(kb, (num_classes,), jnp.float32, -bound, bound)
        # build-time lane padding (ONCE; reused by every forward call)
        self.w_padded, self.b_padded = prepare_padded_params(self.w, self.b)

    def forward(self, x, *, outputs="logits", block_batch=None, block_k=None):
        return linear_classifier_forward(x, self.w_padded, self.b_padded,
                                         self.num_classes, outputs=outputs,
                                         block_batch=block_batch, block_k=block_k)

    def predict(self, x):
        logits = self.forward(x, outputs="logits")   # logits-only: half the writeback
        return jnp.argmax(logits, axis=1)

    def predict_proba(self, x):
        return self.forward(x, outputs="probs")      # probs-only: half the writeback


# --------------------------------------------------------------------------------------
# self-test
# --------------------------------------------------------------------------------------
if __name__ == "__main__":
    key = jax.random.PRNGKey(0)

    # --- Case 1: tiny f32 problem (fast path, W resident, no accumulator) -------------
    B, D, C = 8, 32, 10
    k1, k2, key = jax.random.split(key, 3)
    x = jax.random.normal(k1, (B, D), jnp.float32)
    model = LinearClassifierModel(D, C, key=k2)

    logits, probs = model.forward(x, outputs="both")
    logits = jax.block_until_ready(logits)
    probs = jax.block_until_ready(probs)

    ref_logits = x @ model.w + model.b
    ref_probs = jax.nn.softmax(ref_logits, axis=1)
    assert logits.shape == (B, C) and probs.shape == (B, C)
    assert jnp.allclose(logits, ref_logits, atol=1e-5, rtol=1e-5)
    assert jnp.allclose(probs, ref_probs, atol=1e-5, rtol=1e-5)

    preds = jax.block_until_ready(model.predict(x))                 # Model.predict
    assert jnp.array_equal(preds, jnp.argmax(ref_logits, axis=1))
    probs_only = jax.block_until_ready(model.predict_proba(x))      # Model.predict_proba
    assert jnp.allclose(probs_only, ref_probs, atol=1e-5, rtol=1e-5)

    # --- Case 2: forced K-tiling (ragged last K tile, masked in-kernel) ---------------
    B2, D2, C2 = 24, 160, 10
    k3, k4, key = jax.random.split(key, 3)
    x2 = jax.random.normal(k3, (B2, D2), jnp.float32)
    model2 = LinearClassifierModel(D2, C2, key=k4)
    logits2, probs2 = model2.forward(x2, outputs="both", block_batch=8, block_k=128)
    logits2 = jax.block_until_ready(logits2)
    probs2 = jax.block_until_ready(probs2)
    ref_logits2 = x2 @ model2.w + model2.b
    assert jnp.allclose(logits2, ref_logits2, atol=1e-4, rtol=1e-4)
    assert jnp.allclose(probs2, jax.nn.softmax(ref_logits2, axis=1), atol=1e-4, rtol=1e-4)

    # --- Case 3: bf16 inputs feed the MXU directly (no in-kernel f32 upcast) ----------
    k5, key = jax.random.split(key)
    model_b = LinearClassifierModel(D, C, key=k5, param_dtype=jnp.bfloat16)
    xb = x.astype(jnp.bfloat16)
    logits_b, probs_b = model_b.forward(xb, outputs="both")
    logits_b = jax.block_until_ready(logits_b)
    probs_b = jax.block_until_ready(probs_b)
    ref_lb = xb.astype(jnp.float32) @ model_b.w.astype(jnp.float32) + model_b.b
    assert jnp.allclose(logits_b.astype(jnp.float32), ref_lb, atol=2e-2, rtol=2e-2)
    assert jnp.allclose(probs_b.astype(jnp.float32),
                        jax.nn.softmax(ref_lb, axis=1), atol=1e-2, rtol=1e-2)

    print("KERNEL_OK")
</pallas_src>

<mosaic_0001>
module attributes {stable_mosaic.version = 11 : i64} {
  func.func @kernel(%arg0: i32, %arg1: memref<8x32xf32, #tpu.memory_space<vmem>>, %arg2: memref<32x128xf32, #tpu.memory_space<vmem>>, %arg3: memref<1x128xf32, #tpu.memory_space<vmem>>, %arg4: memref<8x128xf32, #tpu.memory_space<vmem>>, %arg5: memref<8x128xf32, #tpu.memory_space<vmem>>) attributes {dimension_semantics = [#tpu.dimension_semantics<parallel>], iteration_bounds = array<i64: 1>, scalar_prefetch = 0 : i64, scratch_operands = 0 : i64, tpu.core_type = #tpu.core_type<tc>, window_params = [{transform_indices = @transform_0, window_bounds = array<i64: 8, 32>}, {pipeline_mode = #tpu.pipeline_mode<synchronous>, transform_indices = @transform_1, window_bounds = array<i64: 32, 128>}, {pipeline_mode = #tpu.pipeline_mode<synchronous>, transform_indices = @transform_2, window_bounds = array<i64: 1, 128>}, {transform_indices = @transform_3, window_bounds = array<i64: 8, 128>}, {transform_indices = @transform_4, window_bounds = array<i64: 8, 128>}]} {
    %c0 = arith.constant 0 : index
    %c0_0 = arith.constant 0 : index
    %0 = vector.load %arg1[%c0, %c0_0] : memref<8x32xf32, #tpu.memory_space<vmem>>, vector<8x32xf32>
    %c0_1 = arith.constant 0 : index
    %c0_2 = arith.constant 0 : index
    %1 = vector.load %arg2[%c0_1, %c0_2] : memref<32x128xf32, #tpu.memory_space<vmem>>, vector<32x128xf32>
    %cst = arith.constant dense<0.000000e+00> : vector<8x128xf32>
    %2 = tpu.matmul %0, %1, %cst {dimension_numbers = #tpu.dot_dimension_numbers<[1], [0], [0], [1], [0, 0, 1, 1], [], []>} : vector<8x32xf32>, vector<32x128xf32>, vector<8x128xf32> -> vector<8x128xf32>
    %c0_3 = arith.constant 0 : index
    %c0_4 = arith.constant 0 : index
    %3 = vector.load %arg3[%c0_3, %c0_4] : memref<1x128xf32, #tpu.memory_space<vmem>>, vector<1x128xf32>
    %4 = vector.broadcast %3 : vector<1x128xf32> to vector<8x128xf32>
    %5 = arith.addf %2, %4 : vector<8x128xf32>
    %c0_5 = arith.constant 0 : index
    %c0_6 = arith.constant 0 : index
    %6 = vector.load %arg4[%c0_5, %c0_6] : memref<8x128xf32, #tpu.memory_space<vmem>>, vector<8x128xf32>
    tpu.vector_store %arg4[%c0_5, %c0_6], %5 {strides = array<i32>} : memref<8x128xf32, #tpu.memory_space<vmem>>, vector<8x128xf32>,
    %cst_7 = arith.constant dense<0xFF800000> : vector<8xf32>
    %7 = vector.multi_reduction <maximumf>, %5, %cst_7 [1] : vector<8x128xf32> to vector<8xf32>
    %8 = vector.shape_cast %7 : vector<8xf32> to vector<8x1xf32>
    %9 = vector.broadcast %8 : vector<8x1xf32> to vector<8x128xf32>
    %10 = arith.subf %5, %9 : vector<8x128xf32>
    %11 = math.exp %10 : vector<8x128xf32>
    %cst_8 = arith.constant dense<0.000000e+00> : vector<8xf32>
    %12 = vector.multi_reduction <add>, %11, %cst_8 [1] : vector<8x128xf32> to vector<8xf32>
    %13 = vector.shape_cast %12 : vector<8xf32> to vector<8x1xf32>
    %14 = tpu.reciprocal %13 {approx = true} : vector<8x1xf32> -> vector<8x1xf32>
    %15 = arith.mulf %13, %14 : vector<8x1xf32>
    %cst_9 = arith.constant 2.000000e+00 : f32
    %16 = vector.broadcast %cst_9 : f32 to vector<8x1xf32>
    %17 = arith.subf %16, %15 : vector<8x1xf32>
    %18 = arith.mulf %14, %17 : vector<8x1xf32>
    %19 = vector.broadcast %18 : vector<8x1xf32> to vector<8x128xf32>
    %20 = arith.mulf %11, %19 : vector<8x128xf32>
    %c0_10 = arith.constant 0 : index
    %c0_11 = arith.constant 0 : index
    %21 = vector.load %arg5[%c0_10, %c0_11] : memref<8x128xf32, #tpu.memory_space<vmem>>, vector<8x128xf32>
    tpu.vector_store %arg5[%c0_10, %c0_11], %20 {strides = array<i32>} : memref<8x128xf32, #tpu.memory_space<vmem>>, vector<8x128xf32>,
    return
  }
  func.func @transform_0(%arg0: i32) -> (i32, i32) {
    %c0_i32 = arith.constant 0 : i32
    %c0_i32_0 = arith.constant 0 : i32
    return %arg0, %c0_i32 : i32, i32
  }
  func.func @transform_1(%arg0: i32) -> (i32, i32) {
    %c0_i32 = arith.constant 0 : i32
    %c0_i32_0 = arith.constant 0 : i32
    %c0_i32_1 = arith.constant 0 : i32
    return %c0_i32, %c0_i32_0 : i32, i32
  }
  func.func @transform_2(%arg0: i32) -> (i32, i32) {
    %c0_i32 = arith.constant 0 : i32
    %c0_i32_0 = arith.constant 0 : i32
    %c0_i32_1 = arith.constant 0 : i32
    return %c0_i32, %c0_i32_0 : i32, i32
  }
  func.func @transform_3(%arg0: i32) -> (i32, i32) {
    %c0_i32 = arith.constant 0 : i32
    %c0_i32_0 = arith.constant 0 : i32
    return %arg0, %c0_i32 : i32, i32
  }
  func.func @transform_4(%arg0: i32) -> (i32, i32) {
    %c0_i32 = arith.constant 0 : i32
    %c0_i32_0 = arith.constant 0 : i32
    return %arg0, %c0_i32 : i32, i32
  }
}

</mosaic_0001>

<bundles_post_ra>
// kernel: tpu_custom_call.1
= control target key start
LH: loop header
LB: loop body
LE: loop exit
PB: predicated region body
PF: predicated region fallthrough
CT: control target
= control target key end

     0   :  { %10 = vsyncpa [#allocation3], 0  ;;  %s399_s0 = inlined_call_operand.hbm [shape: f32[8,32], index: 0, kind: input, shape index: {}]   ;;  %s400_s1 = inlined_call_operand.hbm [shape: f32[32,128], index: 1, kind: input, shape index: {}]   ;;  %s401_s2 = inlined_call_operand.vmem [shape: f32[1,128], index: 2, kind: input, shape index: {}]   ;;  %s402_s3 = inlined_call_operand.hbm [shape: f32[8,128], index: 3, kind: output, shape index: {0}]   ;;  %s403_s4 = inlined_call_operand.hbm [shape: f32[8,128], index: 4, kind: output, shape index: {1}]  }
   0x1   :  { %11 = vsyncpa [#allocation6], 0 }
   0x2   :  { %12 = vsyncpa [#allocation4], 0 }
   0x3   :  { %13 = vsyncpa [#allocation9], 0  ;;  %s307_s15 = smov [#allocation2]   ;;  %s308_s17 = smov [#allocation5]  }
   0x4   :  { %s20_s16 = sshll.u32 %s307_s15, 4  ;;  %s29_s18 = sshll.u32 %s308_s17, 4  ;;  %s21_s16 = int_to_ptr.vmem [resolvable:$true] %s20_s16  ;;  %s341_s18 = int_to_ptr.vmem [resolvable:$true] %s29_s18 }
   0x5   :  { %s211_s21 = scalar_lea.hbm %s399_s0, 128 }
   0x6   :  { %p212_p0 = scmp.ne.s32.totalorder %s399_s0, %s211_s21  ;;  %p215_p1 = scmp.lt.u32.totalorder %s211_s21, %s399_s0 }
   0x8   :  { %p217_p2 = pnand %p215_p1, %p212_p0 }
   0xa   :  { %220 = shalt.err (!%p217_p2)
}
   0xb   :  { %s221_s26 = scalar_lea.vmem %s21_s16, 128  ;;  %p226_p4 = scmp.lt.s32.totalorder %s21_s16, %s21_s16 }
   0xc   :  { %p222_p3 = scmp.ne.s32.totalorder %s21_s16, %s221_s26  ;;  %p227_p5 = scmp.lt.s32.totalorder %s221_s26, %s221_s26 }
   0xe   :  { %p228_p6 = por %p227_p5, %p226_p4 }
  0x10   :  { %p229_p7 = pnand %p228_p6, %p222_p3 }
  0x12   :  { %232 = shalt.err (!%p229_p7)
}
  0x13   :  { %23 = dma.hbm_to_vmem [thread:$0]  %s399_s0, 128, %s21_s16, [#allocation3]  }
  0x14   :  { %s233_s5 = scalar_lea.hbm %s400_s1, 512 }
  0x15   :  { %p234_p8 = scmp.ne.s32.totalorder %s400_s1, %s233_s5  ;;  %p237_p9 = scmp.lt.u32.totalorder %s233_s5, %s400_s1 }
  0x17   :  { %p239_p10 = pnand %p237_p9, %p234_p8 }
  0x19   :  { %242 = shalt.err (!%p239_p10)
}
  0x1a   :  { %s243_s10 = scalar_lea.vmem %s341_s18, 512  ;;  %p248_p12 = scmp.lt.s32.totalorder %s341_s18, %s341_s18 }
  0x1b   :  { %p244_p11 = scmp.ne.s32.totalorder %s341_s18, %s243_s10  ;;  %p249_p13 = scmp.lt.s32.totalorder %s243_s10, %s243_s10 }
  0x1d   :  { %p250_p0 = por %p249_p13, %p248_p12 }
  0x1f   :  { %p251_p1 = pnand %p250_p0, %p244_p11 }
  0x21   :  { %254 = shalt.err (!%p251_p1)
}
  0x22   :  { %s309_s0 = smov 128   ;;  %s310_s11 = smov 8  }
  0x23   :  { %35 = dma.hbm_to_vmem [thread:$0]  %s400_s1, 512, %s341_s18, [#allocation6], %s309_s0, %s309_s0, %s310_s11  }
  0x24   :  { %299 = dma.done.wait [#allocation3], 128  }
  0x25   :  { %300 = vsyncadd [#allocation3], 4294967168 }
  0x26   :  { %301 = dma.done.wait [#allocation6], 512  }
  0x27   :  { %302 = vsyncadd [#allocation6], 4294966784  ;;  %v311_v0 = vmov 0.0|0.0   ;;  %vm312_vm0 = vmmov 0   ;;  %v313_v1 = vmov 0.0   ;;  %v45_v2 = vld [vmem:[#allocation5] sm:$0xff] }
  0x28   :  { %192 = vmatprep.subr.bf16.mxu0 %v311_v0  ;;  %189 = vmatprep.mubr.msk.f32.mxu0 %vm312_vm0, %v313_v1  ;;  %v46_v3 = vld [vmem:[#allocation5 + $0x8] sm:$0xff]  ;;  %v47_v4 = vld [vmem:[#allocation5 + $0x10] sm:$0xff]  ;;  %v48_v6 = vld [vmem:[#allocation5 + $0x18] sm:$0xff]  ;;  %vm56_vm1 = vcmask 261120   ;;  %s314_s15 = smov [#allocation7]  }
  0x29   :  { %v193_v5 = vpack.c.bf16 %v46_v3, %v45_v2  ;;  %v196_v7 = vpack.c.bf16 %v48_v6, %v47_v4  ;;  %v44_v8 = vld [vmem:[#allocation2] sm:$0xff]  ;;  %s150_s16 = sshll.u32 %s314_s15, 4  ;;  %s151_s16 = int_to_ptr.vmem [resolvable:$true] %s150_s16 }
  0x2a   :  { %v174_v9 = vld [vmem:[%s401_s2] ss:$0 sm:$0xff]  ;;  %s255_s17 = scalar_lea.vmem %s151_s16, 128  ;;  %p260_p3 = scmp.lt.s32.totalorder %s151_s16, %s151_s16 }
  0x2b   :  { %194 = vmatpush3.bf16.msra.mxu0 %v193_v5  ;;  %p256_p2 = scmp.ne.s32.totalorder %s151_s16, %s255_s17  ;;  %p261_p4 = scmp.lt.s32.totalorder %s255_s17, %s255_s17 }
  0x2c   :  { %195 = vmatprep.subr.bf16.mxu0 %v311_v0 }
  0x2d   :  { %p262_p5 = por %p261_p4, %p260_p3 }
  0x2f   :  { %197 = vmatpush3.bf16.msra.mxu0 %v196_v7  ;;  %p263_p6 = pnand %p262_p5, %p256_p2 }
  0x32   :  { %190 = vmatmul.mubr.msk.f32.vlgmr.msra.gmra.mrb[0].mxu0 %vm56_vm1, %v44_v8 }
 0x105   :  { %v126_v10 = vpop.f32.mrb[0].mxu0 }
 0x106   :  { %v127_v11 = vadd.f32 %v174_v9, %v126_v10  ;;  %v191_v12 = vpop.f32.mrb[1].mxu0 }
 0x108   :  { %130 = vst [vmem:[#allocation7] sm:$0xff] %v127_v11  ;;  %131 = vmax.xlane.f32.xlu0 %v127_v11 }
 0x195   :  { %v132_v13 = vpop.xlane.xlu0 %131 }
 0x196   :  { %v133_v14 = vsub.f32 %v127_v11, %v132_v13 }
 0x198   :  { %v134_v15 = vmul.f32 1.442695, %v133_v14 }
 0x19a   :  { %207 = vpow2.f32 %v134_v15 }
 0x1a4   :  { %v208_v16 = vpop.eup %207 }
 0x1a5   :  { %136 = vadd.xlane.f32.xlu0 %v208_v16 }
 0x1a6   :  { %266 = shalt.err (!%p263_p6)
}
 0x1a7   :  { %s267_s19 = scalar_lea.hbm %s402_s3, 128 }
 0x1a8   :  { %p268_p7 = scmp.ne.s32.totalorder %s402_s3, %s267_s19  ;;  %p271_p8 = scmp.lt.u32.totalorder %s267_s19, %s402_s3 }
 0x1aa   :  { %p273_p9 = pnand %p271_p8, %p268_p7 }
 0x1ac   :  { %276 = shalt.err (!%p273_p9)
}
 0x1ad   :  { %153 = dma.vmem_to_hbm [thread:$0]  %s151_s16, 128, %s402_s3, [#allocation4]  }
 0x1ae   :  { %s315_s26 = smov [#allocation8]  }
 0x1af   :  { %s160_s27 = sshll.u32 %s315_s26, 4  ;;  %s161_s27 = int_to_ptr.vmem [resolvable:$true] %s160_s27 }
 0x1b0   :  { %s277_s28 = scalar_lea.vmem %s161_s27, 128  ;;  %p282_p11 = scmp.lt.s32.totalorder %s161_s27, %s161_s27 }
 0x1b1   :  { %p278_p10 = scmp.ne.s32.totalorder %s161_s27, %s277_s28  ;;  %p283_p12 = scmp.lt.s32.totalorder %s277_s28, %s277_s28 }
 0x1b3   :  { %p284_p13 = por %p283_p12, %p282_p11 }
 0x1b5   :  { %p285_p0 = pnand %p284_p13, %p278_p10 }
 0x232   :  { %v137_v17 = vpop.xlane.xlu0 %136 }
 0x233   :  { %209 = vrcp.f32 %v137_v17 }
 0x23d   :  { %v210_v18 = vpop.eup %209 }
 0x23e   :  { %v139_v19 = vmul.f32 %v210_v18, %v137_v17 }
 0x240   :  { %v140_v20 = vsub.f32 2.0, %v139_v19 }
 0x242   :  { %v141_v21 = vmul.f32 %v210_v18, %v140_v20 }
 0x244   :  { %v142_v22 = vmul.f32 %v208_v16, %v141_v21 }
 0x246   :  { %143 = vst [vmem:[#allocation8] sm:$0xff] %v142_v22 }
 0x247   :  { %288 = shalt.err (!%p285_p0)
}
 0x248   :  { %s289_s30 = scalar_lea.hbm %s403_s4, 128 }
 0x249   :  { %p290_p1 = scmp.ne.s32.totalorder %s403_s4, %s289_s30  ;;  %p293_p2 = scmp.lt.u32.totalorder %s289_s30, %s403_s4 }
 0x24b   :  { %p295_p3 = pnand %p293_p2, %p290_p1 }
 0x24d   :  { %298 = shalt.err (!%p295_p3)
}
 0x24e   :  { %163 = dma.vmem_to_hbm [thread:$0]  %s161_s27, 128, %s403_s4, [#allocation9]  }
 0x24f   :  { %303 = dma.done.wait [#allocation4], 128  }
 0x250   :  { %304 = vsyncadd [#allocation4], 4294967168 }
 0x251   :  { %305 = dma.done.wait [#allocation9], 128  }
 0x252   :  { %306 = vsyncadd [#allocation9], 4294967168 }
 0x253   :  { %170 = vsyncpa [#allocation3], 1 }
 0x254   :  { %171 = vsyncpa [#allocation6], 1 }
 0x255   :  { %172 = vsyncpa [#allocation4], 1 }
 0x256   :  { %173 = vsyncpa [#allocation9], 1 }

</bundles_post_ra>
